<compile_context>
chip_gen: v5e
topology: v5e:2x2
jax: 0.10.0
libtpu: 0.0.40
codegen_flags: <defaults>
</compile_context>

<pallas_src>
import functools
import math

import jax
import jax.numpy as jnp
import numpy as np
from jax.experimental import pallas as pl
from jax.experimental.pallas import tpu as pltpu


def _tpu_defaults():
    """(head-group lane-width target, use bf16 exp) for the local TPU gen."""
    try:
        kind = jax.devices()[0].device_kind.lower()
    except Exception:
        kind = ""
    newer = ("v6" in kind) or ("v7" in kind)
    # v6e/v7x: 2x256x256 MXU + bf16 EUP -> 256-lane groups, bf16 probs.
    # v5e and older: 128-wide MXU tiles, no bf16 EUP/VPU -> 128, f32 exp.
    return (256 if newer else 128), newer


def prepare_params(params, hidden_size, num_heads):
    """One-time parameter transform (hoisted out of the per-call path).

    Folds 1/sqrt(head_size) into the query weight/bias and casts the weight
    matrices to bf16 MXU feeds; biases stay f32 (added to f32 accumulators).
    """
    H = hidden_size
    d = H // num_heads
    scale = 1.0 / math.sqrt(d)
    return {
        "wq": (params["wq"] * scale).astype(jnp.bfloat16),
        "bq": (params["bq"] * scale).reshape(1, H).astype(jnp.float32),
        "wk": params["wk"].astype(jnp.bfloat16),
        "bk": params["bk"].reshape(1, H).astype(jnp.float32),
        "wv": params["wv"].astype(jnp.bfloat16),
        "bv": params["bv"].reshape(1, H).astype(jnp.float32),
    }


def _self_attention_kernel(
    hidden_ref,      # [1, S, H]  f32   (one batch element, full sequence)
    mask_ref,        # [1, 1, S]  f32
    wq_ref, bq_ref,  # [H, H] bf16 (VMEM-resident), [1, H] f32 (scale folded)
    wk_ref, bk_ref,
    wv_ref, bv_ref,
    out_ref,         # [1, TQ, Gd]
    kT_scratch,      # [Gd, S] bf16  (persists across q tiles)
    v_scratch,       # [S, Gd] bf16
    *,
    heads_per_block: int,
    head_size: int,
    q_tile: int,
    group_width: int,
    num_groups: int,
    bf16_probs: bool,
):
    qi = pl.program_id(2)
    gd = group_width

    # Column band of the resident weights for the current head group.  When
    # there is a single group the slice is the whole (lane) extent (static);
    # otherwise gd is a multiple of 128, so the dynamic offset is lane-aligned.
    if num_groups == 1:
        col = slice(None)
    else:
        col = pl.ds(pl.multiple_of(pl.program_id(1) * gd, gd), gd)

    # K/V projection for this (batch, head-group) is computed once, on the
    # first query tile, and reused from VMEM scratch for the remaining tiles.
    # K is stored transposed so the score matmul needs no per-tile relayout.
    @pl.when(qi == 0)
    def _():
        x = hidden_ref[0].astype(jnp.bfloat16)                     # [S, H]
        k = jnp.dot(x, wk_ref[:, col],
                    preferred_element_type=jnp.float32) + bk_ref[:, col]
        v = jnp.dot(x, wv_ref[:, col],
                    preferred_element_type=jnp.float32) + bv_ref[:, col]
        kT_scratch[...] = k.T.astype(jnp.bfloat16)                 # [Gd, S]
        v_scratch[...] = v.astype(jnp.bfloat16)                    # [S, Gd]

    # Query projection for the current tile (1/sqrt(d) already in wq/bq).
    row0 = pl.multiple_of(qi * q_tile, q_tile)
    x_q = hidden_ref[0, pl.ds(row0, q_tile), :].astype(jnp.bfloat16)
    q = jnp.dot(x_q, wq_ref[:, col],
                preferred_element_type=jnp.float32) + bq_ref[:, col]
    q = q.astype(jnp.bfloat16)                                     # [TQ, Gd]

    mask_bias = (1.0 - mask_ref[0]) * -10000.0                     # [1, S] f32

    kT = kT_scratch[...]
    v = v_scratch[...]

    ctx_blocks = []
    for h in range(heads_per_block):
        lo = h * head_size
        qh = q[:, lo:lo + head_size]                               # [TQ, d]
        khT = kT[lo:lo + head_size, :]                             # [d,  S]
        vh = v[:, lo:lo + head_size]                               # [S,  d]

        s = jnp.dot(qh, khT, preferred_element_type=jnp.float32)   # [TQ, S]
        s = s + mask_bias
        s = s - jnp.max(s, axis=-1, keepdims=True)

        if bf16_probs:
            # v6e/v7x: bf16 EUP exp; keep the row-sum in f32.
            p = jnp.exp(s.astype(jnp.bfloat16))                    # [TQ, S]
            denom = jnp.sum(p, axis=-1, keepdims=True, dtype=jnp.float32)
        else:
            # v5e: no bf16 EUP/VPU — exp in f32, cast probs for the MXU.
            p32 = jnp.exp(s)
            denom = jnp.sum(p32, axis=-1, keepdims=True)
            p = p32.astype(jnp.bfloat16)

        # Deferred softmax normalization: PV on un-normalized probs, then
        # scale the [TQ, d] context (S/d x fewer elements than scaling p).
        inv = pl.reciprocal(denom, approx=True)                    # [TQ, 1]
        ctx = jnp.dot(p, vh, preferred_element_type=jnp.float32)   # [TQ, d]
        ctx_blocks.append(ctx * inv)

        # TODO(synk): dropout on attention_probs is identity (eval / p=0.0).

    # Single lane-dense store of the whole head-group context slab.
    out_ref[0] = jnp.concatenate(ctx_blocks, axis=-1).astype(out_ref.dtype)


def self_attention(hidden_states, attention_mask, prepared_params, *,
                   num_heads, target_lanes=None, bf16_probs=None):
    """hidden_states: [B, S, H] f32, attention_mask: [B, S] (1 = keep)."""
    B, S, H = hidden_states.shape
    if H % num_heads != 0:
        raise ValueError("hidden size must be a multiple of num_heads")
    d = H // num_heads

    auto_lanes, auto_bf16 = _tpu_defaults()
    if target_lanes is None:
        target_lanes = auto_lanes
    if bf16_probs is None:
        bf16_probs = auto_bf16

    # Heads per grid step: target the per-generation MXU output width
    # (256 lanes on v6e/v7x, 128 on v5e); fall back to all heads if the slab
    # would be neither a multiple of 128 nor the full hidden dim.
    g = min(num_heads, max(1, target_lanes // d))
    while num_heads % g:
        g -= 1
    gd = g * d
    if gd % 128 != 0 and gd != H:
        g, gd = num_heads, H
    n_groups = num_heads // g

    # Query tile: pipeline depth + a second work axis at real sizes.
    if S % 256 == 0:
        tq = 256
    elif S % 128 == 0:
        tq = 128
    else:
        tq = S
    n_qt = S // tq

    mask3 = attention_mask.reshape(B, 1, S).astype(jnp.float32)

    kernel = functools.partial(
        _self_attention_kernel,
        heads_per_block=g, head_size=d, q_tile=tq,
        group_width=gd, num_groups=n_groups, bf16_probs=bf16_probs)

    # Full weights / biases stay VMEM-resident: constant block index across
    # the whole grid -> DMA'd once, never re-streamed per (batch, group).
    w_spec = pl.BlockSpec((H, H), lambda b, gi, qi: (0, 0))
    b_spec = pl.BlockSpec((1, H), lambda b, gi, qi: (0, 0))

    # Advisory cost estimate for XLA scheduling around the custom call.
    flops = 6 * B * S * H * H + 4 * B * S * S * H
    transcendentals = B * num_heads * S * S
    bytes_accessed = 2 * B * S * H * 4 + 3 * H * H * 2 + 3 * H * 4 + B * S * 4

    # VMEM budget derived from the actual per-step footprint (with margin)
    # instead of a fixed number; floor at 32 MiB, cap below v7x physical.
    vmem_est = (
        2 * S * H * 4            # hidden f32 block, double-buffered
        + 2 * S * 4              # mask block
        + 2 * 3 * H * H * 2      # resident bf16 weights (+ buffer slack)
        + 2 * 3 * H * 4          # biases
        + 2 * tq * gd * 4        # output block, double-buffered
        + 2 * S * gd * 2         # K^T / V bf16 scratch
        + (g + 3) * tq * S * 4   # per-head score/prob temporaries headroom
    )
    vmem_limit = min(max(int(vmem_est * 3 // 2), 32 * 1024 * 1024),
                     96 * 1024 * 1024)

    return pl.pallas_call(
        kernel,
        out_shape=jax.ShapeDtypeStruct((B, S, H), hidden_states.dtype),
        grid_spec=pltpu.PrefetchScalarGridSpec(
            num_scalar_prefetch=0,
            grid=(B, n_groups, n_qt),
            in_specs=[
                pl.BlockSpec((1, S, H), lambda b, gi, qi: (b, 0, 0)),  # hidden
                pl.BlockSpec((1, 1, S), lambda b, gi, qi: (b, 0, 0)),  # mask
                w_spec, b_spec,                                        # query
                w_spec, b_spec,                                        # key
                w_spec, b_spec,                                        # value
            ],
            out_specs=pl.BlockSpec((1, tq, gd), lambda b, gi, qi: (b, qi, gi)),
            scratch_shapes=[
                pltpu.VMEM((gd, S), jnp.bfloat16),   # K^T slab for this group
                pltpu.VMEM((S, gd), jnp.bfloat16),   # V slab for this group
            ],
        ),
        compiler_params=pltpu.CompilerParams(
            # batch & head-group axes are independent (keep B * n_groups >= 2
            # for v7x megacore occupancy); the q-tile axis reuses the K/V
            # scratch it projected -> must stay arbitrary.
            dimension_semantics=("parallel", "parallel", "arbitrary"),
            vmem_limit_bytes=vmem_limit,
        ),
        cost_estimate=pl.CostEstimate(
            flops=flops, transcendentals=transcendentals,
            bytes_accessed=bytes_accessed),
    )(hidden_states, mask3,
      prepared_params["wq"], prepared_params["bq"],
      prepared_params["wk"], prepared_params["bk"],
      prepared_params["wv"], prepared_params["bv"])


def _reference(hidden_states, attention_mask, params, *, num_heads):
    """Plain-JAX f32 reference mirroring the PyTorch forward exactly."""
    B, S, H = hidden_states.shape
    d = H // num_heads
    mask = (1.0 - attention_mask)[:, None, None, :] * -10000.0       # [B,1,1,S]

    def proj(w, b):
        y = jnp.einsum("bsh,hd->bsd", hidden_states, w) + b
        return y.reshape(B, S, num_heads, d).transpose(0, 2, 1, 3)   # [B,nH,S,d]

    q = proj(params["wq"], params["bq"])
    k = proj(params["wk"], params["bk"])
    v = proj(params["wv"], params["bv"])
    scores = jnp.einsum("bhqd,bhkd->bhqk", q, k) / math.sqrt(d) + mask
    probs = jax.nn.softmax(scores, axis=-1)
    ctx = jnp.einsum("bhqk,bhkd->bhqd", probs, v)
    return ctx.transpose(0, 2, 1, 3).reshape(B, S, H)


if __name__ == "__main__":
    B, S, H, NUM_HEADS = 2, 8, 32, 4
    key = jax.random.PRNGKey(0)
    k_hs, k_wq, k_bq, k_wk, k_bk, k_wv, k_bv = jax.random.split(key, 7)

    hidden_states = jax.random.normal(k_hs, (B, S, H), dtype=jnp.float32)
    # Mask: first row keeps everything, second row masks the last 3 positions.
    attention_mask = jnp.ones((B, S), dtype=jnp.float32)
    attention_mask = attention_mask.at[1, -3:].set(0.0)

    scale = 1.0 / math.sqrt(H)
    params = {
        "wq": jax.random.uniform(k_wq, (H, H), jnp.float32, -scale, scale),
        "bq": jax.random.uniform(k_bq, (H,), jnp.float32, -scale, scale),
        "wk": jax.random.uniform(k_wk, (H, H), jnp.float32, -scale, scale),
        "bk": jax.random.uniform(k_bk, (H,), jnp.float32, -scale, scale),
        "wv": jax.random.uniform(k_wv, (H, H), jnp.float32, -scale, scale),
        "bv": jax.random.uniform(k_bv, (H,), jnp.float32, -scale, scale),
    }

    prepared = prepare_params(params, H, NUM_HEADS)
    out = self_attention(hidden_states, attention_mask, prepared,
                         num_heads=NUM_HEADS)
    out = jax.block_until_ready(out)

    ref = _reference(hidden_states, attention_mask, params,
                     num_heads=NUM_HEADS)
    # Tolerance accounts for bf16 MXU operands / bf16 exp / approx reciprocal
    # vs. the pure-f32 reference.
    np.testing.assert_allclose(np.asarray(out), np.asarray(ref),
                               rtol=5e-2, atol=5e-2)

    print("KERNEL_OK")
</pallas_src>

<mosaic_0001>
module attributes {stable_mosaic.version = 11 : i64} {
  func.func @_self_attention_kernel(%arg0: i32, %arg1: i32, %arg2: i32, %arg3: memref<1x8x32xf32, #tpu.memory_space<vmem>>, %arg4: memref<1x1x8xf32, #tpu.memory_space<vmem>>, %arg5: memref<32x32xbf16, #tpu.memory_space<vmem>>, %arg6: memref<1x32xf32, #tpu.memory_space<vmem>>, %arg7: memref<32x32xbf16, #tpu.memory_space<vmem>>, %arg8: memref<1x32xf32, #tpu.memory_space<vmem>>, %arg9: memref<32x32xbf16, #tpu.memory_space<vmem>>, %arg10: memref<1x32xf32, #tpu.memory_space<vmem>>, %arg11: memref<1x8x32xf32, #tpu.memory_space<vmem>>, %arg12: memref<32x8xbf16, #tpu.memory_space<vmem>>, %arg13: memref<8x32xbf16, #tpu.memory_space<vmem>>) attributes {dimension_semantics = [#tpu.dimension_semantics<parallel>, #tpu.dimension_semantics<parallel>, #tpu.dimension_semantics<arbitrary>], iteration_bounds = array<i64: 2, 1, 1>, scalar_prefetch = 0 : i64, scratch_operands = 2 : i64, tpu.core_type = #tpu.core_type<tc>, window_params = [{transform_indices = @transform_0, window_bounds = array<i64: 1, 8, 32>}, {transform_indices = @transform_1, window_bounds = array<i64: 1, 1, 8>}, {pipeline_mode = #tpu.pipeline_mode<synchronous>, transform_indices = @transform_2, window_bounds = array<i64: 32, 32>}, {pipeline_mode = #tpu.pipeline_mode<synchronous>, transform_indices = @transform_3, window_bounds = array<i64: 1, 32>}, {pipeline_mode = #tpu.pipeline_mode<synchronous>, transform_indices = @transform_4, window_bounds = array<i64: 32, 32>}, {pipeline_mode = #tpu.pipeline_mode<synchronous>, transform_indices = @transform_5, window_bounds = array<i64: 1, 32>}, {pipeline_mode = #tpu.pipeline_mode<synchronous>, transform_indices = @transform_6, window_bounds = array<i64: 32, 32>}, {pipeline_mode = #tpu.pipeline_mode<synchronous>, transform_indices = @transform_7, window_bounds = array<i64: 1, 32>}, {transform_indices = @transform_8, window_bounds = array<i64: 1, 8, 32>}]} {
    %c0_i32 = arith.constant 0 : i32
    %0 = arith.cmpi eq, %arg2, %c0_i32 : i32
    %1 = arith.extui %0 : i1 to i32
    %c0_i32_0 = arith.constant 0 : i32
    %2 = arith.cmpi ne, %1, %c0_i32_0 : i32
    scf.if %2 {
      %c0_34 = arith.constant 0 : index
      %c0_35 = arith.constant 0 : index
      %c0_36 = arith.constant 0 : index
      %99 = vector.load %arg3[%c0_34, %c0_35, %c0_36] : memref<1x8x32xf32, #tpu.memory_space<vmem>>, vector<1x8x32xf32>
      %100 = vector.shape_cast %99 : vector<1x8x32xf32> to vector<8x32xf32>
      %101 = arith.truncf %100 : vector<8x32xf32> to vector<8x32xbf16>
      %c0_37 = arith.constant 0 : index
      %c0_38 = arith.constant 0 : index
      %102 = vector.load %arg7[%c0_37, %c0_38] : memref<32x32xbf16, #tpu.memory_space<vmem>>, vector<32x32xbf16>
      %cst_39 = arith.constant dense<0.000000e+00> : vector<8x32xf32>
      %103 = tpu.matmul %101, %102, %cst_39 {dimension_numbers = #tpu.dot_dimension_numbers<[1], [0], [0], [1], [0, 0, 1, 1], [], []>} : vector<8x32xbf16>, vector<32x32xbf16>, vector<8x32xf32> -> vector<8x32xf32>
      %c0_40 = arith.constant 0 : index
      %c0_41 = arith.constant 0 : index
      %104 = vector.load %arg8[%c0_40, %c0_41] : memref<1x32xf32, #tpu.memory_space<vmem>>, vector<1x32xf32>
      %105 = vector.broadcast %104 : vector<1x32xf32> to vector<8x32xf32>
      %106 = arith.addf %103, %105 : vector<8x32xf32>
      %c0_42 = arith.constant 0 : index
      %c0_43 = arith.constant 0 : index
      %107 = vector.load %arg9[%c0_42, %c0_43] : memref<32x32xbf16, #tpu.memory_space<vmem>>, vector<32x32xbf16>
      %cst_44 = arith.constant dense<0.000000e+00> : vector<8x32xf32>
      %108 = tpu.matmul %101, %107, %cst_44 {dimension_numbers = #tpu.dot_dimension_numbers<[1], [0], [0], [1], [0, 0, 1, 1], [], []>} : vector<8x32xbf16>, vector<32x32xbf16>, vector<8x32xf32> -> vector<8x32xf32>
      %c0_45 = arith.constant 0 : index
      %c0_46 = arith.constant 0 : index
      %109 = vector.load %arg10[%c0_45, %c0_46] : memref<1x32xf32, #tpu.memory_space<vmem>>, vector<1x32xf32>
      %110 = vector.broadcast %109 : vector<1x32xf32> to vector<8x32xf32>
      %111 = arith.addf %108, %110 : vector<8x32xf32>
      %112 = tpu.transpose %106, [1, 0] : vector<8x32xf32> -> vector<32x8xf32>
      %113 = arith.truncf %112 : vector<32x8xf32> to vector<32x8xbf16>
      %c0_47 = arith.constant 0 : index
      %c0_48 = arith.constant 0 : index
      %114 = vector.load %arg12[%c0_47, %c0_48] : memref<32x8xbf16, #tpu.memory_space<vmem>>, vector<32x8xbf16>
      tpu.vector_store %arg12[%c0_47, %c0_48], %113 {strides = array<i32>} : memref<32x8xbf16, #tpu.memory_space<vmem>>, vector<32x8xbf16>,
      %115 = arith.truncf %111 : vector<8x32xf32> to vector<8x32xbf16>
      %c0_49 = arith.constant 0 : index
      %c0_50 = arith.constant 0 : index
      %116 = vector.load %arg13[%c0_49, %c0_50] : memref<8x32xbf16, #tpu.memory_space<vmem>>, vector<8x32xbf16>
      tpu.vector_store %arg13[%c0_49, %c0_50], %115 {strides = array<i32>} : memref<8x32xbf16, #tpu.memory_space<vmem>>, vector<8x32xbf16>,
    } else {
    }
    %c8_i32 = arith.constant 8 : i32
    %3 = arith.muli %arg2, %c8_i32 : i32
    %4 = tpu.assume_multiple %3, 8 : i32
    %c0 = arith.constant 0 : index
    %5 = arith.index_cast %4 : i32 to index
    %c0_1 = arith.constant 0 : index
    %6 = vector.load %arg3[%c0, %5, %c0_1] : memref<1x8x32xf32, #tpu.memory_space<vmem>>, vector<1x8x32xf32>
    %7 = vector.shape_cast %6 : vector<1x8x32xf32> to vector<8x32xf32>
    %8 = arith.truncf %7 : vector<8x32xf32> to vector<8x32xbf16>
    %c0_2 = arith.constant 0 : index
    %c0_3 = arith.constant 0 : index
    %9 = vector.load %arg5[%c0_2, %c0_3] : memref<32x32xbf16, #tpu.memory_space<vmem>>, vector<32x32xbf16>
    %cst = arith.constant dense<0.000000e+00> : vector<8x32xf32>
    %10 = tpu.matmul %8, %9, %cst {dimension_numbers = #tpu.dot_dimension_numbers<[1], [0], [0], [1], [0, 0, 1, 1], [], []>} : vector<8x32xbf16>, vector<32x32xbf16>, vector<8x32xf32> -> vector<8x32xf32>
    %c0_4 = arith.constant 0 : index
    %c0_5 = arith.constant 0 : index
    %11 = vector.load %arg6[%c0_4, %c0_5] : memref<1x32xf32, #tpu.memory_space<vmem>>, vector<1x32xf32>
    %12 = vector.broadcast %11 : vector<1x32xf32> to vector<8x32xf32>
    %13 = arith.addf %10, %12 : vector<8x32xf32>
    %14 = arith.truncf %13 : vector<8x32xf32> to vector<8x32xbf16>
    %c0_6 = arith.constant 0 : index
    %c0_7 = arith.constant 0 : index
    %c0_8 = arith.constant 0 : index
    %15 = vector.load %arg4[%c0_6, %c0_7, %c0_8] : memref<1x1x8xf32, #tpu.memory_space<vmem>>, vector<1x1x8xf32>
    %16 = vector.shape_cast %15 : vector<1x1x8xf32> to vector<1x8xf32>
    %cst_9 = arith.constant 1.000000e+00 : f32
    %17 = vector.broadcast %cst_9 : f32 to vector<1x8xf32>
    %18 = arith.subf %17, %16 : vector<1x8xf32>
    %cst_10 = arith.constant -1.000000e+04 : f32
    %19 = vector.broadcast %cst_10 : f32 to vector<1x8xf32>
    %20 = arith.mulf %18, %19 : vector<1x8xf32>
    %c0_11 = arith.constant 0 : index
    %c0_12 = arith.constant 0 : index
    %21 = vector.load %arg12[%c0_11, %c0_12] : memref<32x8xbf16, #tpu.memory_space<vmem>>, vector<32x8xbf16>
    %c0_13 = arith.constant 0 : index
    %c0_14 = arith.constant 0 : index
    %22 = vector.load %arg13[%c0_13, %c0_14] : memref<8x32xbf16, #tpu.memory_space<vmem>>, vector<8x32xbf16>
    %23 = vector.extract_strided_slice %14 {offsets = [0, 0], sizes = [8, 8], strides = [1, 1]} : vector<8x32xbf16> to vector<8x8xbf16>
    %24 = vector.extract_strided_slice %21 {offsets = [0, 0], sizes = [8, 8], strides = [1, 1]} : vector<32x8xbf16> to vector<8x8xbf16>
    %25 = vector.extract_strided_slice %22 {offsets = [0, 0], sizes = [8, 8], strides = [1, 1]} : vector<8x32xbf16> to vector<8x8xbf16>
    %cst_15 = arith.constant dense<0.000000e+00> : vector<8x8xf32>
    %26 = tpu.matmul %23, %24, %cst_15 {dimension_numbers = #tpu.dot_dimension_numbers<[1], [0], [0], [1], [0, 0, 1, 1], [], []>} : vector<8x8xbf16>, vector<8x8xbf16>, vector<8x8xf32> -> vector<8x8xf32>
    %27 = vector.broadcast %20 : vector<1x8xf32> to vector<8x8xf32>
    %28 = arith.addf %26, %27 : vector<8x8xf32>
    %cst_16 = arith.constant dense<0xFF800000> : vector<8xf32>
    %29 = vector.multi_reduction <maximumf>, %28, %cst_16 [1] : vector<8x8xf32> to vector<8xf32>
    %30 = vector.shape_cast %29 : vector<8xf32> to vector<8x1xf32>
    %31 = vector.broadcast %30 : vector<8x1xf32> to vector<8x8xf32>
    %32 = arith.subf %28, %31 : vector<8x8xf32>
    %33 = math.exp %32 : vector<8x8xf32>
    %cst_17 = arith.constant dense<0.000000e+00> : vector<8xf32>
    %34 = vector.multi_reduction <add>, %33, %cst_17 [1] : vector<8x8xf32> to vector<8xf32>
    %35 = vector.shape_cast %34 : vector<8xf32> to vector<8x1xf32>
    %36 = arith.truncf %33 : vector<8x8xf32> to vector<8x8xbf16>
    %37 = tpu.reciprocal %35 {approx = true} : vector<8x1xf32> -> vector<8x1xf32>
    %cst_18 = arith.constant dense<0.000000e+00> : vector<8x8xf32>
    %38 = tpu.matmul %36, %25, %cst_18 {dimension_numbers = #tpu.dot_dimension_numbers<[1], [0], [0], [1], [0, 0, 1, 1], [], []>} : vector<8x8xbf16>, vector<8x8xbf16>, vector<8x8xf32> -> vector<8x8xf32>
    %39 = vector.broadcast %37 : vector<8x1xf32> to vector<8x8xf32>
    %40 = arith.mulf %38, %39 : vector<8x8xf32>
    %41 = vector.extract_strided_slice %14 {offsets = [0, 8], sizes = [8, 8], strides = [1, 1]} : vector<8x32xbf16> to vector<8x8xbf16>
    %42 = vector.extract_strided_slice %21 {offsets = [8, 0], sizes = [8, 8], strides = [1, 1]} : vector<32x8xbf16> to vector<8x8xbf16>
    %43 = vector.extract_strided_slice %22 {offsets = [0, 8], sizes = [8, 8], strides = [1, 1]} : vector<8x32xbf16> to vector<8x8xbf16>
    %cst_19 = arith.constant dense<0.000000e+00> : vector<8x8xf32>
    %44 = tpu.matmul %41, %42, %cst_19 {dimension_numbers = #tpu.dot_dimension_numbers<[1], [0], [0], [1], [0, 0, 1, 1], [], []>} : vector<8x8xbf16>, vector<8x8xbf16>, vector<8x8xf32> -> vector<8x8xf32>
    %45 = vector.broadcast %20 : vector<1x8xf32> to vector<8x8xf32>
    %46 = arith.addf %44, %45 : vector<8x8xf32>
    %cst_20 = arith.constant dense<0xFF800000> : vector<8xf32>
    %47 = vector.multi_reduction <maximumf>, %46, %cst_20 [1] : vector<8x8xf32> to vector<8xf32>
    %48 = vector.shape_cast %47 : vector<8xf32> to vector<8x1xf32>
    %49 = vector.broadcast %48 : vector<8x1xf32> to vector<8x8xf32>
    %50 = arith.subf %46, %49 : vector<8x8xf32>
    %51 = math.exp %50 : vector<8x8xf32>
    %cst_21 = arith.constant dense<0.000000e+00> : vector<8xf32>
    %52 = vector.multi_reduction <add>, %51, %cst_21 [1] : vector<8x8xf32> to vector<8xf32>
    %53 = vector.shape_cast %52 : vector<8xf32> to vector<8x1xf32>
    %54 = arith.truncf %51 : vector<8x8xf32> to vector<8x8xbf16>
    %55 = tpu.reciprocal %53 {approx = true} : vector<8x1xf32> -> vector<8x1xf32>
    %cst_22 = arith.constant dense<0.000000e+00> : vector<8x8xf32>
    %56 = tpu.matmul %54, %43, %cst_22 {dimension_numbers = #tpu.dot_dimension_numbers<[1], [0], [0], [1], [0, 0, 1, 1], [], []>} : vector<8x8xbf16>, vector<8x8xbf16>, vector<8x8xf32> -> vector<8x8xf32>
    %57 = vector.broadcast %55 : vector<8x1xf32> to vector<8x8xf32>
    %58 = arith.mulf %56, %57 : vector<8x8xf32>
    %59 = vector.extract_strided_slice %14 {offsets = [0, 16], sizes = [8, 8], strides = [1, 1]} : vector<8x32xbf16> to vector<8x8xbf16>
    %60 = vector.extract_strided_slice %21 {offsets = [16, 0], sizes = [8, 8], strides = [1, 1]} : vector<32x8xbf16> to vector<8x8xbf16>
    %61 = vector.extract_strided_slice %22 {offsets = [0, 16], sizes = [8, 8], strides = [1, 1]} : vector<8x32xbf16> to vector<8x8xbf16>
    %cst_23 = arith.constant dense<0.000000e+00> : vector<8x8xf32>
    %62 = tpu.matmul %59, %60, %cst_23 {dimension_numbers = #tpu.dot_dimension_numbers<[1], [0], [0], [1], [0, 0, 1, 1], [], []>} : vector<8x8xbf16>, vector<8x8xbf16>, vector<8x8xf32> -> vector<8x8xf32>
    %63 = vector.broadcast %20 : vector<1x8xf32> to vector<8x8xf32>
    %64 = arith.addf %62, %63 : vector<8x8xf32>
    %cst_24 = arith.constant dense<0xFF800000> : vector<8xf32>
    %65 = vector.multi_reduction <maximumf>, %64, %cst_24 [1] : vector<8x8xf32> to vector<8xf32>
    %66 = vector.shape_cast %65 : vector<8xf32> to vector<8x1xf32>
    %67 = vector.broadcast %66 : vector<8x1xf32> to vector<8x8xf32>
    %68 = arith.subf %64, %67 : vector<8x8xf32>
    %69 = math.exp %68 : vector<8x8xf32>
    %cst_25 = arith.constant dense<0.000000e+00> : vector<8xf32>
    %70 = vector.multi_reduction <add>, %69, %cst_25 [1] : vector<8x8xf32> to vector<8xf32>
    %71 = vector.shape_cast %70 : vector<8xf32> to vector<8x1xf32>
    %72 = arith.truncf %69 : vector<8x8xf32> to vector<8x8xbf16>
    %73 = tpu.reciprocal %71 {approx = true} : vector<8x1xf32> -> vector<8x1xf32>
    %cst_26 = arith.constant dense<0.000000e+00> : vector<8x8xf32>
    %74 = tpu.matmul %72, %61, %cst_26 {dimension_numbers = #tpu.dot_dimension_numbers<[1], [0], [0], [1], [0, 0, 1, 1], [], []>} : vector<8x8xbf16>, vector<8x8xbf16>, vector<8x8xf32> -> vector<8x8xf32>
    %75 = vector.broadcast %73 : vector<8x1xf32> to vector<8x8xf32>
    %76 = arith.mulf %74, %75 : vector<8x8xf32>
    %77 = vector.extract_strided_slice %14 {offsets = [0, 24], sizes = [8, 8], strides = [1, 1]} : vector<8x32xbf16> to vector<8x8xbf16>
    %78 = vector.extract_strided_slice %21 {offsets = [24, 0], sizes = [8, 8], strides = [1, 1]} : vector<32x8xbf16> to vector<8x8xbf16>
    %79 = vector.extract_strided_slice %22 {offsets = [0, 24], sizes = [8, 8], strides = [1, 1]} : vector<8x32xbf16> to vector<8x8xbf16>
    %cst_27 = arith.constant dense<0.000000e+00> : vector<8x8xf32>
    %80 = tpu.matmul %77, %78, %cst_27 {dimension_numbers = #tpu.dot_dimension_numbers<[1], [0], [0], [1], [0, 0, 1, 1], [], []>} : vector<8x8xbf16>, vector<8x8xbf16>, vector<8x8xf32> -> vector<8x8xf32>
    %81 = vector.broadcast %20 : vector<1x8xf32> to vector<8x8xf32>
    %82 = arith.addf %80, %81 : vector<8x8xf32>
    %cst_28 = arith.constant dense<0xFF800000> : vector<8xf32>
    %83 = vector.multi_reduction <maximumf>, %82, %cst_28 [1] : vector<8x8xf32> to vector<8xf32>
    %84 = vector.shape_cast %83 : vector<8xf32> to vector<8x1xf32>
    %85 = vector.broadcast %84 : vector<8x1xf32> to vector<8x8xf32>
    %86 = arith.subf %82, %85 : vector<8x8xf32>
    %87 = math.exp %86 : vector<8x8xf32>
    %cst_29 = arith.constant dense<0.000000e+00> : vector<8xf32>
    %88 = vector.multi_reduction <add>, %87, %cst_29 [1] : vector<8x8xf32> to vector<8xf32>
    %89 = vector.shape_cast %88 : vector<8xf32> to vector<8x1xf32>
    %90 = arith.truncf %87 : vector<8x8xf32> to vector<8x8xbf16>
    %91 = tpu.reciprocal %89 {approx = true} : vector<8x1xf32> -> vector<8x1xf32>
    %cst_30 = arith.constant dense<0.000000e+00> : vector<8x8xf32>
    %92 = tpu.matmul %90, %79, %cst_30 {dimension_numbers = #tpu.dot_dimension_numbers<[1], [0], [0], [1], [0, 0, 1, 1], [], []>} : vector<8x8xbf16>, vector<8x8xbf16>, vector<8x8xf32> -> vector<8x8xf32>
    %93 = vector.broadcast %91 : vector<8x1xf32> to vector<8x8xf32>
    %94 = arith.mulf %92, %93 : vector<8x8xf32>
    %95 = tpu.concatenate %40, %58, %76, %94 in 1 : vector<8x8xf32>, vector<8x8xf32>, vector<8x8xf32>, vector<8x8xf32> -> vector<8x32xf32>
    %c0_31 = arith.constant 0 : index
    %c0_32 = arith.constant 0 : index
    %c0_33 = arith.constant 0 : index
    %96 = vector.load %arg11[%c0_31, %c0_32, %c0_33] : memref<1x8x32xf32, #tpu.memory_space<vmem>>, vector<1x8x32xf32>
    %97 = vector.shape_cast %96 : vector<1x8x32xf32> to vector<8x32xf32>
    %98 = vector.shape_cast %95 : vector<8x32xf32> to vector<1x8x32xf32>
    tpu.vector_store %arg11[%c0_31, %c0_32, %c0_33], %98 {strides = array<i32>} : memref<1x8x32xf32, #tpu.memory_space<vmem>>, vector<1x8x32xf32>,
    return
  }
  func.func @transform_0(%arg0: i32, %arg1: i32, %arg2: i32) -> (i32, i32, i32) {
    %c0_i32 = arith.constant 0 : i32
    %c0_i32_0 = arith.constant 0 : i32
    %c0_i32_1 = arith.constant 0 : i32
    return %arg0, %c0_i32, %c0_i32_0 : i32, i32, i32
  }
  func.func @transform_1(%arg0: i32, %arg1: i32, %arg2: i32) -> (i32, i32, i32) {
    %c0_i32 = arith.constant 0 : i32
    %c0_i32_0 = arith.constant 0 : i32
    %c0_i32_1 = arith.constant 0 : i32
    return %arg0, %c0_i32, %c0_i32_0 : i32, i32, i32
  }
  func.func @transform_2(%arg0: i32, %arg1: i32, %arg2: i32) -> (i32, i32) {
    %c0_i32 = arith.constant 0 : i32
    %c0_i32_0 = arith.constant 0 : i32
    %c0_i32_1 = arith.constant 0 : i32
    return %c0_i32, %c0_i32_0 : i32, i32
  }
  func.func @transform_3(%arg0: i32, %arg1: i32, %arg2: i32) -> (i32, i32) {
    %c0_i32 = arith.constant 0 : i32
    %c0_i32_0 = arith.constant 0 : i32
    %c0_i32_1 = arith.constant 0 : i32
    return %c0_i32, %c0_i32_0 : i32, i32
  }
  func.func @transform_4(%arg0: i32, %arg1: i32, %arg2: i32) -> (i32, i32) {
    %c0_i32 = arith.constant 0 : i32
    %c0_i32_0 = arith.constant 0 : i32
    %c0_i32_1 = arith.constant 0 : i32
    return %c0_i32, %c0_i32_0 : i32, i32
  }
  func.func @transform_5(%arg0: i32, %arg1: i32, %arg2: i32) -> (i32, i32) {
    %c0_i32 = arith.constant 0 : i32
    %c0_i32_0 = arith.constant 0 : i32
    %c0_i32_1 = arith.constant 0 : i32
    return %c0_i32, %c0_i32_0 : i32, i32
  }
  func.func @transform_6(%arg0: i32, %arg1: i32, %arg2: i32) -> (i32, i32) {
    %c0_i32 = arith.constant 0 : i32
    %c0_i32_0 = arith.constant 0 : i32
    %c0_i32_1 = arith.constant 0 : i32
    return %c0_i32, %c0_i32_0 : i32, i32
  }
  func.func @transform_7(%arg0: i32, %arg1: i32, %arg2: i32) -> (i32, i32) {
    %c0_i32 = arith.constant 0 : i32
    %c0_i32_0 = arith.constant 0 : i32
    %c0_i32_1 = arith.constant 0 : i32
    return %c0_i32, %c0_i32_0 : i32, i32
  }
  func.func @transform_8(%arg0: i32, %arg1: i32, %arg2: i32) -> (i32, i32, i32) {
    %c0_i32 = arith.constant 0 : i32
    return %arg0, %arg2, %arg1 : i32, i32, i32
  }
}

</mosaic_0001>

<bundles_post_ra>
// kernel: tpu_custom_call.1
= control target key start
LH: loop header
LB: loop body
LE: loop exit
PB: predicated region body
PF: predicated region fallthrough
CT: control target
= control target key end

     0   :  { %s1708_s0 = inlined_call_operand.hbm [shape: f32[2,8,32], index: 0, kind: input, shape index: {}]   ;;  %s1709_s1 = inlined_call_operand.hbm [shape: f32[2,1,8], index: 1, kind: input, shape index: {}]   ;;  %s1710_s2 = inlined_call_operand.hbm [shape: bf16[32,32], index: 2, kind: input, shape index: {}]   ;;  %s1711_s3 = inlined_call_operand.vmem [shape: f32[1,32], index: 3, kind: input, shape index: {}]   ;;  %s1712_s4 = inlined_call_operand.hbm [shape: bf16[32,32], index: 4, kind: input, shape index: {}]   ;;  %s1713_s5 = inlined_call_operand.vmem [shape: f32[1,32], index: 5, kind: input, shape index: {}]   ;;  %s1714_s6 = inlined_call_operand.hbm [shape: bf16[32,32], index: 6, kind: input, shape index: {}]   ;;  %s1715_s7 = inlined_call_operand.vmem [shape: f32[1,32], index: 7, kind: input, shape index: {}]   ;;  %s1716_s8 = inlined_call_operand.hbm [shape: f32[2,8,32], index: 8, kind: output, shape index: {}]  }
   0x1   :  { %1723 = sst [smem:[#allocation25_spill]] %s1710_s2 }
   0x2   :  { %1724 = sst [smem:[#allocation26_spill]] %s1712_s4 }
   0x3   :  { %1725 = sst [smem:[#allocation27_spill]] %s1714_s6 }
   0x4   :  { %13 = vsyncpa [#allocation5], 0 }
   0x5   :  { %15 = vsyncpa [#allocation5 + $0x1], 0 }
   0x6   :  { %16 = vsyncpa [#allocation8], 0 }
   0x7   :  { %18 = vsyncpa [#allocation8 + $0x1], 0 }
   0x8   :  { %19 = vsyncpa [#allocation11], 0 }
   0x9   :  { %20 = vsyncpa [#allocation6], 0 }
   0xa   :  { %22 = vsyncpa [#allocation6 + $0x1], 0  ;;  %s1480_s27 = smov 0   ;;  %s1482_s28 = smov 0  }
   0xb   :  { %s1484_s29 = smov 0   ;;  %s1486_s30 = smov 0  }
   0xc   :  { %s1488_s9 = smov 0   ;;  %s1490_s10 = smov 0  }
   0xd LB: > { %1726 = sst [smem:[#allocation19_spill]] %s1402_s27  ;;  %s1511_s11 = sadd.s32 4294967295, %s1422_s10   ;;  %s1422_s10 = sphi %s1490_s10, %s28_s10   ;;  %s1418_s9 = sphi %s1488_s9, %s1750_s9   ;;  %s1414_s30 = sphi %s1486_s30, %s1749_s30   ;;  %s1410_s29 = sphi %s1484_s29, %s1745_s29   ;;  %s1406_s28 = sphi %s1482_s28, %s1748_s28   ;;  %s1402_s27 = sphi %s1480_s27, %s1747_s27  }
   0xe   : > { %1727 = sst [smem:[#allocation20_spill]] %s1410_s29  ;;  %p994_p0 = scmp.ge.s32.totalorder %s1422_s10, 1 }
   0xf   : > { %p68_p1 = scmp.eq.s32.totalorder %s1511_s11, 0  ;;  %p260_p2 = scmp.lt.s32.totalorder %s1422_s10, 3 }
  0x10   : > { %s1728_s2 = sld [smem:[#allocation25_spill]]  ;;  %s1424_s16 = smov [#allocation9]  }
  0x11   : > { %p1519_p3 = pnand %p994_p0, %p260_p2  ;;  %s273_s17 = sshll.u32 %s1424_s16, 4  ;;  %s274_s17 = int_to_ptr.vmem [resolvable:$true] %s273_s17 }
  0x12   : > { %p998_p6 = scmp.ge.s32.totalorder %s1422_s10, 2  ;;  %s1731_s4 = sld [smem:[#allocation26_spill]] }
  0x13   : > { %p1070_p4 = pneg %p1519_p3  ;;  %s1425_s22 = smov 64  }
  0x14   : > { %s1426_s23 = smov 4   ;;  %s1427_s24 = smov [#allocation10]  }
  0x15   : > { %p1527_p5 = pnand %p1070_p4, %p68_p1  ;;  %s290_s25 = sshll.u32 %s1427_s24, 4  ;;  %s291_s25 = int_to_ptr.vmem [resolvable:$true] %s290_s25 }
  0x16   : > { %s271_s14 = sshll.u32 %s1728_s2, 4  ;;  %s1732_s6 = sld [smem:[#allocation27_spill]]  ;;  %s272_s14 = int_to_ptr.hbm [resolvable:$true] %s271_s14 }
  0x17   : > { %1073 = dma.hbm_to_vmem [thread:$0]  (!%p1527_p5), %s272_s14, 256, %s274_s17, [#allocation8], %s1425_s22, %s1425_s22, %s1426_s23  }
  0x18   : > { %s288_s21 = sshll.u32 %s1731_s4, 4  ;;  %s1428_s16 = smov [#allocation12]   ;;  %s289_s21 = int_to_ptr.hbm [resolvable:$true] %s288_s21 }
  0x19   : > { %1076 = dma.hbm_to_vmem [thread:$0]  (!%p1527_p5), %s289_s21, 256, %s291_s25, [#allocation11], %s1425_s22, %s1425_s22, %s1426_s23  }
  0x1a   : > { %s307_s19 = sshll.u32 %s1428_s16, 4  ;;  %s993_s14 = sadd.s32 4294967294, %s1422_s10   ;;  %s308_s19 = int_to_ptr.vmem [resolvable:$true] %s307_s19 }
  0x1b   : > { %s47_s17 = sadd.s32 1, %s1418_s9  ;;  %s54_s20 = sadd.s32 1, %s1410_s29 }
  0x1c   : > { %s305_s13 = sshll.u32 %s1732_s6, 4  ;;  %p49_p7 = scmp.ge.s32.totalorder %s47_s17, 2  ;;  %s306_s13 = int_to_ptr.hbm [resolvable:$true] %s305_s13 }
  0x1d   : > { %1079 = dma.hbm_to_vmem [thread:$0]  (!%p1527_p5), %s306_s13, 256, %s308_s19, [#allocation11], %s1425_s22, %s1425_s22, %s1426_s23  }
  0x1e   : > { %p61_p8 = scmp.ne.s32.totalorder %s1410_s29, %s1406_s28  ;;  %p62_p9 = scmp.eq.s32.totalorder %s1422_s10, 0 }
  0x1f   : > { %p67_p10 = scmp.ne.s32.totalorder %s1406_s28, %s1402_s27  ;;  %s1752_s17 = smov (%p49_p7, %s47_s17), 0 }
  0x20   : > { %1733 = sst [smem:[#allocation21_spill]] %s1752_s17  ;;  %p1554_p11 = por %p62_p9, %p61_p8 }
  0x21   : > { %p1560_p12 = por %p68_p1, %p67_p10  ;;  %s51_s22 = ssub.s32 %s1418_s9, %s1752_s17 }
  0x22   : > { %p247_p13 = scmp.eq.s32.totalorder %s1511_s11, 1  ;;  %p52_p0 = scmp.eq.s32.totalorder %s51_s22, 0 }
  0x23   : > { %p253_p2 = scmp.eq.s32.totalorder %s993_s14, 1  ;;  %p1094_p5 = scmp.lt.s32.totalorder %s1422_s10, 2 }
  0x24   : > { %p1567_p4 = por %p247_p13, %p61_p8  ;;  %s324_s26 = sand.u32 1, %s1410_s29  }
  0x25   : > { %s1573_s24 = scalar_select %p52_p0, %s1410_s29, %s54_s20  }
  0x26   : > { %s1736_s23 = scalar_select %p1567_p4, 1, 0 }
  0x27   : > { %1738 = sst [smem:[#allocation23_spill]] %s1573_s24  ;;  %p1575_p7 = por %p253_p2, %p67_p10 }
  0x28   : > { %1737 = sst [smem:[#allocation22_spill]] %s1736_s23  ;;  %s999_s12 = sshll.u32 %s324_s26, 3 }
  0x29   : > { %s1739_s25 = scalar_select %p1575_p7, 1, 0 }
  0x2a   : > { %s1000_s13 = sshll.u32 %s1418_s9, 3  ;;  %s328_s14 = scalar_lea.vmem [#allocation4], %s999_s12 }
  0x2b   : > { %1740 = sst [smem:[#allocation24_spill]] %s1739_s25  ;;  %s332_s22 = scalar_lea.hbm %s1708_s0, %s1000_s13 }
  0x2c   : > { %s336_s2 = sshll.u32 %s328_s14, 4  ;;  %s334_s4 = sshll.u32 %s332_s22, 4  ;;  %s337_s2 = int_to_ptr.vmem [resolvable:$true] %s336_s2  ;;  %s335_s4 = int_to_ptr.hbm [resolvable:$true] %s334_s4 }
  0x2d   : > { %p1081_p8 = pnand %p1094_p5, %p1554_p11  ;;  %s343_s20 = sand.u32 1, %s1422_s10  }
  0x2e   : > { %s325_s6 = scalar_lea.sflag [#allocation5], %s324_s26  ;;  %s349_s29 = scalar_lea.hbm %s1709_s1, %s1418_s9 }
  0x2f   : > { %1083 = dma.hbm_to_vmem [thread:$0]  (!%p1081_p8), %s335_s4, 128, %s337_s2, %s325_s6  }
  0x30   : > { %s346_s25 = scalar_lea.vmem [#allocation7], %s324_s26  ;;  %s351_s23 = sshll.u32 %s349_s29, 4  ;;  %s352_s23 = int_to_ptr.hbm [resolvable:$true] %s351_s23 }
  0x31   : > { %s353_s27 = sshll.u32 %s346_s25, 4  ;;  %s344_s13 = scalar_lea.sflag [#allocation8], %s343_s20  ;;  %s354_s27 = int_to_ptr.vmem [resolvable:$true] %s353_s27 }
  0x32   : > { %1086 = dma.hbm_to_vmem [thread:$0]  (!%p1081_p8), %s352_s23, 16, %s354_s27, %s344_s13  }
  0x33   : > { %362 = sbr.rel (%p1519_p3) target bundleno = 956 (0x3bc), region = 52  ;;  %s1594_s21 = sand.u32 (!%p1519_p3), 1, %s1406_s28  }
  0x34   : > { %s1002_s2 = sshll.u32 (!%p1519_p3), %s1594_s21, 3  ;;  %s365_s4 = scalar_lea.sflag (!%p1519_p3), [#allocation5], %s1594_s21 }
  0x35   : > { %s368_s6 = scalar_lea.vmem (!%p1519_p3), [#allocation4], %s1002_s2 }
  0x38   : > { %1381 = dma.done.wait (%p1560_p12), %s365_s4, 128  }
  0x39   : > { %1383 = vsyncadd (%p1560_p12), %s365_s4, 4294967168  ;;  %s374_s27 = sand.u32 1, %s1511_s11   ;;  %s377_s15 = scalar_lea.vmem [#allocation7], %s1594_s21 }
  0x3a   : > { %s375_s29 = scalar_lea.sflag [#allocation8], %s374_s27 }
  0x3b   : > { %1385 = dma.done.wait (%p1560_p12), %s375_s29, 16  }
  0x3c   : > { %1387 = vsyncadd (%p1560_p12), %s375_s29, 4294967280 }
  0x3d   : > { %1389 = dma.done.wait (%p68_p1), [#allocation8], 256  }
  0x3e   : > { %1391 = vsyncadd (%p68_p1), [#allocation8], 4294967040 }
  0x3f   : > { %1393 = dma.done.wait (%p68_p1), [#allocation11], 512  }
  0x40   : > { %1395 = vsyncadd (%p68_p1), [#allocation11], 4294966784  ;;  %v1047_v0 = vld [vmem:[#allocation10 + $0x8] sm:$0xff]  ;;  %v1046_v1 = vld [vmem:[#allocation10] sm:$0xff]  ;;  %vm457_vm0 = vcmask 261120   ;;  %s1429_s24 = smov 112  }
  0x41   : > { %v1051_v2 = vld [vmem:[#allocation9 + $0x8] sm:$0xff]  ;;  %467 = vmatpush.bf16.msra.mxu0 %v1047_v0  ;;  %v1050_v4 = vld [vmem:[#allocation9] sm:$0xff]  ;;  %v1159_v8 = vld [vmem:[%s1713_s5] ss:$0 sm:$0xff]  ;;  %s1430_s25 = smov 104   ;;  %s1431_s26 = smov 120  }
  0x42   : > { %v435_v3 = vld [vmem:[%s368_s6] sm:$0xff]  ;;  %585 = vmatpush.bf16.msra.mxu2 %v1051_v2  ;;  %v1048_v7 = vld [vmem:[#allocation12] sm:$0xff]  ;;  %vm543_vm1 = vcmask 60416   ;;  %vm608_vm2 = vcmask 1043456   ;;  %vm604_vm3 = vcmask 64512   ;;  %vm549_vm4 = vcmask 257024  }
  0x43   : > { %v436_v5 = vpack.c.bf16 %v435_v3, %v435_v3  ;;  %v1049_v6 = vld [vmem:[#allocation12 + $0x8] sm:$0xff]  ;;  %v1160_v11 = vld [vmem:[%s1711_s3] ss:$0 sm:$0xff]  ;;  %s1432_s19 = smov 16   ;;  %s1433_s22 = smov 8   ;;  %vm837_vm5 = vcmask 130048  }
  0x44   : > { %500 = vmatpush.bf16.msra.mxu1 %v1049_v6  ;;  %v1161_v35 = vld [vmem:[%s1715_s7] ss:$0 sm:$0xff]  ;;  %s1434_s14 = smov 24   ;;  %s1043_s20 = sshll.u32 %s1414_s30, 3  ;;  %vm839_vm6 = vcmask 195584  }
  0x45   : > { %468 = vmatpush.bf16.msra.mxu0 %v1046_v1  ;;  %v593_v47 = vld [vmem:[%s377_s15] sm:$0x1]  ;;  %s855_s6 = scalar_lea.hbm %s1716_s8, %s1043_s20  ;;  %s429_s27 = scalar_lea.vmem [#allocation13], %s1002_s2 }
  0x46   : > { %586 = vmatpush.bf16.msra.mxu2 %v1050_v4  ;;  %v594_v48 = vsub.f32 1.0, %v593_v47  ;;  %s857_s29 = sshll.u32 %s429_s27, 4  ;;  %s859_s15 = sshll.u32 %s855_s6, 4  ;;  %s858_s29 = int_to_ptr.vmem [resolvable:$true] %s857_s29  ;;  %s860_s15 = int_to_ptr.hbm [resolvable:$true] %s859_s15 }
  0x47   : > { %s843_s30 = scalar_lea.sflag [#allocation6], %s1594_s21  ;;  %s1342_s17 = sshra.s32 %s860_s15, 4  ;;  %s1343_s17 = int_to_ptr.hbm [resolvable:$true] %s1342_s17 }
  0x48   : > { %1015 = vmatmul.msk.bf16.vlgmr.msra.gmra.mxu0 %vm457_vm0, %v436_v5  ;;  %501 = vmatpush.bf16.msra.mxu1 %v1048_v7  ;;  %v595_v49 = vmul.f32 -10000.0, %v594_v48  ;;  %s1344_s18 = scalar_lea.hbm %s1343_s17, 8  ;;  %p1349_p10 = scmp.lt.s32.totalorder %s1343_s17, %s1716_s8 }
  0x49   : > { %1033 = vmatmul.msk.bf16.vlgmr.msra.gmra.mxu2 %vm457_vm0, %v436_v5  ;;  %p1345_p1 = scmp.ne.s32.totalorder %s1343_s17, %s1344_s18 }
  0x4a   : > { %v602_v50 = vperm.slane %v595_v49, 0 }
  0x4b   : > { %1024 = vmatmul.msk.bf16.vlgmr.msra.gmra.mxu1 %vm457_vm0, %v436_v5  ;;  %p1346_p3 = pnand %p1345_p1, %p1567_p4 }
  0x4d   : > { %p1347_p9 = pneg %p1346_p3 }
  0xc5   : > { %v470_v9 = vpop.f32.mrf.mxu0 }
  0xc6   : > { %v471_v10 = vadd.f32 %v1159_v8, %v470_v9 }
  0xc8   : > { %507 = vxpose.xlu0.b32.start.end [1/1] (short) (narrow) %v471_v10, 32  ;;  %v503_v36 = vpop.f32.mrf.mxu1 }
  0xc9   : > { %v504_v38 = vadd.f32 %v1161_v35, %v503_v36 }
  0xcb   : > { %v548_v39 = vpack.c.bf16 %v504_v38, %v504_v38 }
  0xcc   : > { %v588_v12 = vpop.f32.mrf.mxu2 }
  0xcd   : > { %v472_v13 = vpop.f32.mrf.mxu0  ;;  %v589_v14 = vadd.f32 %v1160_v11, %v588_v12  ;;  %550 = vst.msk [vmem:[#allocation3] sm:$0xf] %vm549_vm4, %v548_v39 }
  0xcf   : > { %v592_v15 = vpack.c.bf16 %v589_v14, %v589_v14 }
  0xd0   : > { %v505_v40 = vpop.f32.mrf.mxu1 }
  0xd1   : > { %v657_v16 = vunpack.c.l.b16 %v592_v15 }
  0xd3   : > { %v658_v17 = vpack.c.b16 %v657_v16, %v657_v16 }
  0xd4   : > { %v590_v18 = vpop.f32.mrf.mxu2  ;;  %v600_v41 = vld [vmem:[#allocation3] sm:$0xf] }
  0xd5   : > { %716 = vrot.lane.b32.xlu1 %v658_v17, %s1429_s24  ;;  %v692_v42 = vunpack.c.l.b16 %v600_v41  ;;  %v640_v46 = vsel %vm608_vm2, %v600_v41, 0 }
  0xd7   : > { %v693_v43 = vpack.c.b16 %v692_v42, %v692_v42 }
  0xd9   : > { %694 = vrot.lane.b32.xlu2 %v693_v43, %s1431_s26 }
  0xdd   : > { %770 = vrot.lane.b32.xlu1 %v658_v17, %s1430_s25 }
 0x133   : > { %v695_v59 = vpop.permute.xlu2 %694 }
 0x134   : > { %v700_v60 = vsel %vm608_vm2, %v695_v59, 0 }
 0x135   : > { %709 = vmatpush.bf16.msrb.mxu1 %v700_v60 }
 0x147   : > { %v717_v33 = vpop.permute.xlu1 %716 }
 0x14e   : > { %659 = vrot.lane.b32.xlu0 %v658_v17, %s1431_s26 }
 0x14f   : > { %v771_v45 = vpop.permute.xlu1 %770 }
 0x16c   : > { %v523_v19 = vpop.trf.xlu0 }
 0x16d   : > { %v539_v20 = vpack.c.bf16 %v523_v19, %v523_v19 }
 0x16f   : > { %544 = vst.msk [vmem:[#allocation2] sm:$0xf] %vm543_vm1, %v539_v20 }
 0x174   : > { %v524_v21 = vpop.trf.xlu0 }
 0x175   : > { %v540_v22 = vpack.c.bf16 %v524_v21, %v524_v21 }
 0x176   : > { %v596_v23 = vld [vmem:[#allocation2] sm:$0xf] }
 0x177   : > { %545 = vst.msk [vmem:[#allocation2 + $0x4] sm:$0xf] %vm543_vm1, %v540_v22  ;;  %v610_v24 = vsel %vm608_vm2, %v596_v23, 0 }
 0x178   : > { %619 = vmatpush.bf16.msra.mxu3 %v610_v24 }
 0x17b   : > { %1034 = vmatmul.msk.bf16.vlgmr.msra.gmra.mxu3 %vm604_vm3, %v592_v15 }
 0x17c   : > { %v525_v25 = vpop.trf.xlu0  ;;  %649 = vmatpush.bf16.msrb.mxu3 %v640_v46 }
 0x17d   : > { %v541_v26 = vpack.c.bf16 %v525_v25, %v525_v25 }
 0x17e   : > { %v597_v27 = vld [vmem:[#allocation2 + $0x4] sm:$0xf] }
 0x17f   : > { %546 = vst.msk [vmem:[#allocation2 + $0x8] sm:$0xf] %vm543_vm1, %v541_v26  ;;  %v665_v28 = vsel %vm608_vm2, %v597_v27, 0 }
 0x180   : > { %674 = vmatpush.bf16.msrb.mxu0 %v665_v28 }
 0x184   : > { %v526_v29 = vpop.trf.xlu0 }
 0x185   : > { %v542_v30 = vpack.c.bf16 %v526_v29, %v526_v29 }
 0x186   : > { %v598_v31 = vld [vmem:[#allocation2 + $0x8] sm:$0xf] }
 0x187   : > { %v722_v32 = vsel %vm608_vm2, %v598_v31, 0  ;;  %547 = vst.msk [vmem:[#allocation2 + $0xc] sm:$0xf] %vm543_vm1, %v542_v30 }
 0x188   : > { %731 = vmatpush.bf16.msrb.mxu2 %v722_v32 }
 0x18b   : > { %1038 = vmatmul.msk.bf16.vlgmr.msrb.gmra.mxu2 %vm604_vm3, %v717_v33 }
 0x18e   : > { %v599_v34 = vld [vmem:[#allocation2 + $0xc] sm:$0xf] }
 0x18f   : > { %v776_v37 = vsel %vm608_vm2, %v599_v34, 0 }
 0x190   : > { %785 = vmatpush.bf16.msra.mxu0 %v776_v37 }
 0x1c0   : > { %v660_v44 = vpop.permute.xlu0 %659 }
 0x1c1   : > { %1036 = vmatmul.msk.bf16.vlgmr.msrb.gmra.mxu0 %vm604_vm3, %v660_v44 }
 0x1d1   : > { %1040 = vmatmul.msk.bf16.vlgmr.msra.gmra.mxu0 %vm604_vm3, %v771_v45 }
 0x1fe   : > { %v621_v51 = vpop.f32.mrf.mxu3 }
 0x1ff   : > { %v622_v52 = vadd.f32 %v621_v51, %v602_v50 }
 0x201   : > { %v625_v53 = vsel %vm604_vm3, %v622_v52, -inf }
 0x202   : > { %626 = vmax.xlane.f32.xlu2 %v625_v53 }
 0x206   : > { %v623_v54 = vpop.f32.mrf.mxu3 }
 0x20e   : > { %v733_v55 = vpop.f32.mrf.mxu2 }
 0x20f   : > { %v734_v56 = vadd.f32 %v733_v55, %v602_v50 }
 0x211   : > { %v737_v57 = vsel %vm604_vm3, %v734_v56, -inf }
 0x212   : > { %738 = vmax.xlane.f32.xlu1 %v737_v57 }
 0x216   : > { %v735_v58 = vpop.f32.mrf.mxu2 }
 0x22b   : > { %748 = vrot.lane.b32.xlu1 %v693_v43, %s1429_s24  ;;  %s1348_s24 = scalar_lea.hbm %s1716_s8, 16 }
 0x22c   : > { %p1350_p11 = scmp.lt.s32.totalorder %s1348_s24, %s1344_s18 }
 0x22e   : > { %p1351_p12 = por %p1350_p11, %p1349_p10 }
 0x230   : > { %p1352_p13 = pnand %p1351_p12, %p1347_p9 }
 0x23e   : > { %v676_v61 = vpop.f32.mrf.mxu0 }
 0x23f   : > { %v677_v62 = vadd.f32 %v676_v61, %v602_v50 }
 0x241   : > { %v680_v63 = vsel %vm604_vm3, %v677_v62, -inf }
 0x242   : > { %681 = vmax.xlane.f32.xlu2 %v680_v63 }
 0x246   : > { %v678_v0 = vpop.f32.mrf.mxu0 }
 0x24e   : > { %v787_v1 = vpop.f32.mrf.mxu0 }
 0x24f   : > { %v788_v2 = vadd.f32 %v787_v1, %v602_v50 }
 0x251   : > { %v791_v3 = vsel %vm604_vm3, %v788_v2, -inf }
 0x252   : > { %792 = vmax.xlane.f32.xlu2 %v791_v3 }
 0x256   : > { %v789_v4 = vpop.f32.mrf.mxu0 }
 0x26a   : > { %802 = vrot.lane.b32.xlu2 %v693_v43, %s1430_s25 }
 0x275   : > { %v627_v5 = vpop.xlane.xlu2 %626 }
 0x276   : > { %v628_v6 = vsub.f32 %v622_v52, %v627_v5 }
 0x278   : > { %v629_v7 = vmul.f32 1.442695, %v628_v6 }
 0x27a   : > { %1162 = vpow2.f32 %v629_v7 }
 0x280   : > { %v1163_v8 = vpop.eup %1162 }
 0x281   : > { %v634_v9 = vpack.c.bf16 %v1163_v8, %v1163_v8  ;;  %v631_v32 = vsel %vm604_vm3, %v1163_v8, 0.0 }
 0x283   : > { %1035 = vmatmul.msk.bf16.vlgmr.msrb.gmra.mxu3 %vm604_vm3, %v634_v9 }
 0x285   : > { %v739_v10 = vpop.xlane.xlu1 %738 }
 0x286   : > { %v740_v11 = vsub.f32 %v734_v56, %v739_v10 }
 0x288   : > { %v741_v12 = vmul.f32 1.442695, %v740_v11 }
 0x28a   : > { %1164 = vpow2.f32 %v741_v12 }
 0x290   : > { %v1165_v13 = vpop.eup %1164 }
 0x291   : > { %v743_v14 = vsel %vm604_vm3, %v1165_v13, 0.0  ;;  %v746_v17 = vpack.c.bf16 %v1165_v13, %v1165_v13 }
 0x293   : > { %744 = vadd.xlane.f32.xlu2 %v743_v14 }
 0x29d   : > { %v749_v15 = vpop.permute.xlu1 %748 }
 0x29e   : > { %v754_v16 = vsel %vm608_vm2, %v749_v15, 0 }
 0x29f   : > { %763 = vmatpush.bf16.msra.mxu3 %v754_v16 }
 0x2a2   : > { %1039 = vmatmul.msk.bf16.vlgmr.msra.gmra.mxu3 %vm604_vm3, %v746_v17 }
 0x2b5   : > { %v682_v18 = vpop.xlane.xlu2 %681 }
 0x2b6   : > { %v683_v19 = vsub.f32 %v677_v62, %v682_v18 }
 0x2b8   : > { %v684_v20 = vmul.f32 1.442695, %v683_v19 }
 0x2ba   : > { %1166 = vpow2.f32 %v684_v20 }
 0x2c0   : > { %v1167_v21 = vpop.eup %1166 }
 0x2c1   : > { %v686_v22 = vsel %vm604_vm3, %v1167_v21, 0.0  ;;  %v689_v23 = vpack.c.bf16 %v1167_v21, %v1167_v21 }
 0x2c2   : > { %687 = vadd.xlane.f32.xlu1 %v686_v22 }
 0x2c3   : > { %1037 = vmatmul.msk.bf16.vlgmr.msrb.gmra.mxu1 %vm604_vm3, %v689_v23 }
 0x2c5   : > { %v793_v24 = vpop.xlane.xlu2 %792 }
 0x2c6   : > { %v794_v25 = vsub.f32 %v788_v2, %v793_v24 }
 0x2c8   : > { %v795_v26 = vmul.f32 1.442695, %v794_v25 }
 0x2ca   : > { %1168 = vpow2.f32 %v795_v26 }
 0x2cd   : > { %v803_v27 = vpop.permute.xlu2 %802 }
 0x2ce   : > { %v808_v28 = vsel %vm608_vm2, %v803_v27, 0 }
 0x2cf   : > { %817 = vmatpush.bf16.msra.mxu1 %v808_v28 }
 0x2d0   : > { %v1169_v29 = vpop.eup %1168 }
 0x2d1   : > { %v800_v30 = vpack.c.bf16 %v1169_v29, %v1169_v29  ;;  %v797_v31 = vsel %vm604_vm3, %v1169_v29, 0.0 }
 0x2d2   : > { %798 = vadd.xlane.f32.xlu1 %v797_v31 }
 0x2d3   : > { %1041 = vmatmul.msk.bf16.vlgmr.msra.gmra.mxu1 %vm604_vm3, %v800_v30 }
 0x2da   : > { %632 = vadd.xlane.f32.xlu1 %v631_v32 }
 0x306   : > { %v651_v33 = vpop.f32.mrf.mxu3  ;;  %v745_v35 = vpop.xlane.xlu2 %744 }
 0x307   : > { %1170 = vrcp.f32 %v745_v35 }
 0x30d   : > { %v1171_v36 = vpop.eup %1170 }
 0x30e   : > { %v653_v34 = vpop.f32.mrf.mxu3 }
 0x325   : > { %v765_v37 = vpop.f32.mrf.mxu3 }
 0x326   : > { %v769_v38 = vmul.f32 %v1171_v36, %v765_v37 }
 0x328   : > { %829 = vrot.lane.b32.xlu0 %v769_v38, %s1432_s19 }
 0x32d   : > { %v767_v39 = vpop.f32.mrf.mxu3 }
 0x335   : > { %v688_v40 = vpop.xlane.xlu1 %687 }
 0x336   : > { %1172 = vrcp.f32 %v688_v40 }
 0x33c   : > { %v1173_v41 = vpop.eup %1172 }
 0x340   : > { %v711_v42 = vpop.f32.mrf.mxu1 }
 0x341   : > { %v715_v43 = vmul.f32 %v1173_v41, %v711_v42 }
 0x343   : > { %825 = vrot.lane.b32.xlu1 %v715_v43, %s1433_s22 }
 0x345   : > { %v799_v44 = vpop.xlane.xlu1 %798 }
 0x346   : > { %1174 = vrcp.f32 %v799_v44 }
 0x348   : > { %v713_v45 = vpop.f32.mrf.mxu1 }
 0x34c   : > { %v1175_v46 = vpop.eup %1174 }
 0x34d   : > { %v633_v50 = vpop.xlane.xlu1 %632 }
 0x34e   : > { %1176 = vrcp.f32 %v633_v50 }
 0x350   : > { %v819_v47 = vpop.f32.mrf.mxu1 }
 0x351   : > { %v823_v48 = vmul.f32 %v1175_v46, %v819_v47 }
 0x353   : > { %833 = vrot.lane.b32.xlu2 %v823_v48, %s1434_s14 }
 0x354   : > { %v1177_v51 = vpop.eup %1176 }
 0x355   : > { %v655_v52 = vmul.f32 %v1177_v51, %v651_v33 }
 0x358   : > { %v821_v49 = vpop.f32.mrf.mxu1 }
 0x39a   : > { %v830_v54 = vpop.permute.xlu0 %829 }
 0x3ad   : > { %v834_v56 = vpop.permute.xlu2 %833 }
 0x3b5   : > { %v826_v53 = vpop.permute.xlu1 %825 }
 0x3b6   : > { %v836_v55 = vsel %vm604_vm3, %v655_v52, %v826_v53 }
 0x3b7   : > { %v838_v57 = vsel %vm837_vm5, %v836_v55, %v830_v54 }
 0x3b8   : > { %v840_v58 = vsel %vm839_vm6, %v838_v57, %v834_v56 }
 0x3b9   : > { %841 = vst.msk [vmem:[%s429_s27] sm:$0xff] %vm457_vm0, %v840_v58 }
 0x3ba   : > { %1355 = shalt.err (!%p1352_p13)
}
 0x3bb   : > { %1068 = dma.vmem_to_hbm [thread:$0]  (%p1567_p4), %s858_s29, 128, %s860_s15, %s843_s30  }
 0x3bc PF: > { %s1742_s21 = sld [smem:[#allocation19_spill]]  ;;  %p1088_p0 = pnand %p998_p6, %p1575_p7 }
 0x3be   : > { %p1089_p2 = pneg %p1088_p0 }
 0x3c2   : > { %s871_s16 = sand.u32 1, %s1742_s21  }
 0x3c3   : > { %s872_s19 = scalar_lea.sflag [#allocation6], %s871_s16 }
 0x3c4   : > { %1397 = dma.done.wait (%p1089_p2), %s872_s19, 128  }
 0x3c5   : > { %1399 = vsyncadd (%p1089_p2), %s872_s19, 4294967168  ;;  %s28_s10 = sadd.s32 1, %s1422_s10   ;;  %s1744_s22 = sld [smem:[#allocation20_spill]] }
 0x3c6   : > { %p25_p5 = scmp.ge.s32.totalorder %s28_s10, 4   ;;  %s1745_s29 = sld [smem:[#allocation23_spill]] }
 0x3c7   : > { %s1746_s14 = sld [smem:[#allocation21_spill]]  ;;  %s1747_s27 = smov %s1406_s28 }
 0x3c8   : > { %s1749_s30 = smov %s1418_s9 }
 0x3c9   :  { %27 = sbr.rel (!%p25_p5) target bundleno = 13 (0xd), region = 127 }
 0x3cb   : > { %s1748_s28 = smov %s1744_s22 }
 0x3cd   : > { %s1750_s9 = smov %s1746_s14 }
 0x3ce   :  { %878 = vsyncpa [#allocation5], 1 }
 0x3cf   :  { %880 = vsyncpa [#allocation5 + $0x1], 1 }
 0x3d0   :  { %881 = vsyncpa [#allocation8], 1 }
 0x3d1   :  { %883 = vsyncpa [#allocation8 + $0x1], 1 }
 0x3d2   :  { %884 = vsyncpa [#allocation11], 1 }
 0x3d3   :  { %885 = vsyncpa [#allocation6], 1 }
 0x3d4   :  { %887 = vsyncpa [#allocation6 + $0x1], 1 }

</bundles_post_ra>
